<compile_context>
chip_gen: v7x
topology: tpu7x:2x2x1
jax: 0.10.0
libtpu: 0.0.40
codegen_flags: <defaults>
</compile_context>

<pallas_src>
import jax
import jax.numpy as jnp
from jax.experimental import pallas as pl
from jax.experimental.pallas import tpu as pltpu

_LANE = 128
_SUBLANE_F32 = 8


def _cdiv(a, b):
    return -(-a // b)


def _device_tuning():
    """Per-generation (target block bytes, minimum grid steps)."""
    try:
        kind = jax.devices()[0].device_kind.lower()
    except Exception:
        return 4 * 1024 * 1024, 1
    if "v5 lite" in kind or "v5e" in kind or "v5lite" in kind:
        return 3 * 1024 * 1024, 1          # ~0.82 TB/s: 3 MiB already <5% step overhead
    if "v6" in kind:
        return 4 * 1024 * 1024, 1          # ~1.35 TB/s
    if "v7" in kind or "7x" in kind:
        return 8 * 1024 * 1024, 8          # ~3.2 TB/s, 2 TCs/chip -> keep >=8 grid steps
    return 4 * 1024 * 1024, 1


def _drop_path_kernel(x_ref, scale_ref, o_ref):
    # x_ref: (tr, tc) in x.dtype, scale_ref: (tr, 1) float32 (lane-broadcast),
    # o_ref: (tr, tc). Mixed-precision multiply; only the product is cast.
    o_ref[...] = (x_ref[...] * scale_ref[...]).astype(o_ref.dtype)


def drop_path_pallas(x, drop_prob=0.0, training=False, *, key=None):
    """Stochastic Depth per sample, matching the PyTorch reference semantics."""
    if drop_prob == 0.0 or not training:
        return x
    if key is None:
        raise ValueError(
            "drop_path_pallas: an explicit PRNG key is required when training "
            "with drop_prob > 0 (a fixed default key would reuse the same mask)."
        )

    keep_prob = 1.0 - float(drop_prob)
    orig_shape = x.shape
    B = x.shape[0]
    itemsize = jnp.dtype(x.dtype).itemsize
    sublane = max(_SUBLANE_F32, (4 // itemsize) * _SUBLANE_F32)  # 8 f32 / 16 bf16 / 32 int8

    # Per-sample keep mask in float32 (unbiased even for bf16 inputs), with the
    # 1/keep_prob division folded in. Stays float32 all the way to the kernel.
    u = jax.random.uniform(key, (B, 1), dtype=jnp.float32)
    scale = jnp.floor(keep_prob + u) / keep_prob  # 0.0 or 1/keep_prob, float32

    # Flatten; no feature padding (partial edge blocks are masked by Pallas).
    x2d = x.reshape(B, -1)
    F = x2d.shape[1]

    # Fold rows when B is small so the sublane axis fills up - only when the
    # folded feature width stays a multiple of 128 (keeps stores lane-dense).
    k = 1
    while B * k < sublane and F % (2 * k * _LANE) == 0:
        k *= 2
    rows, cols = B * k, F // k
    if k > 1:
        x2d = x2d.reshape(rows, cols)
        scale = jnp.repeat(scale, k, axis=0)  # k folded rows share their sample's scale

    target_bytes, min_grid_steps = _device_tuning()

    # --- column tile: prefer full-width row bands (contiguous HBM bursts) ---
    if cols <= _LANE or sublane * cols * itemsize <= target_bytes:
        tc = cols  # full extent: always a legal block dim
    else:
        tc = max(_LANE, (target_bytes // (sublane * itemsize)) // _LANE * _LANE)
        tc = min(tc, (cols // _LANE) * _LANE)  # multiple of 128; edge block masked

    # --- row tile ---
    if tc == cols:
        tr_budget = max(sublane, (target_bytes // max(1, cols * itemsize)) // sublane * sublane)
    else:
        tr_budget = sublane
    tr = rows if rows <= tr_budget else tr_budget

    n_row = _cdiv(rows, tr)
    n_col = _cdiv(cols, tc)

    # v7x: make sure both TensorCores get work if the big blocks collapsed the grid.
    if min_grid_steps > 1 and n_row * n_col < min_grid_steps and rows > sublane:
        tr_small = max(sublane, _cdiv(_cdiv(rows, min_grid_steps), sublane) * sublane)
        if tr_small < tr:
            tr = tr_small
            n_row = _cdiv(rows, tr)

    block_bytes = tr * tc * itemsize
    # Double-buffered input + output blocks (+ scale column) + slack.
    vmem_limit = min(64 * 1024 * 1024,
                     max(8 * 1024 * 1024, 4 * block_bytes + 2 * 1024 * 1024))

    cost = pl.CostEstimate(
        flops=rows * cols,
        transcendentals=0,
        bytes_accessed=2 * rows * cols * itemsize + rows * 4,
    )

    out2d = pl.pallas_call(
        _drop_path_kernel,
        out_shape=jax.ShapeDtypeStruct((rows, cols), x.dtype),
        grid_spec=pltpu.PrefetchScalarGridSpec(
            num_scalar_prefetch=0,
            grid=(n_row, n_col),
            in_specs=[
                pl.BlockSpec((tr, tc), lambda i, j: (i, j)),
                pl.BlockSpec((tr, 1), lambda i, j: (i, 0)),  # tiny f32 scale column
            ],
            out_specs=pl.BlockSpec((tr, tc), lambda i, j: (i, j)),
        ),
        compiler_params=pltpu.CompilerParams(
            dimension_semantics=("parallel", "parallel"),
            vmem_limit_bytes=vmem_limit,
        ),
        cost_estimate=cost,
    )(x2d, scale)

    return out2d.reshape(orig_shape)


class DropPath:
    """Drop paths (Stochastic Depth) per sample, Pallas-backed."""

    def __init__(self, drop_prob=None):
        self.drop_prob = drop_prob if drop_prob is not None else 0.0
        self.training = True

    def __call__(self, x, key=None):
        return drop_path_pallas(x, self.drop_prob, self.training, key=key)


if __name__ == "__main__":
    key = jax.random.PRNGKey(0)
    k_x, k_mask, k_x2, k_mask2, k_x3, k_mask3 = jax.random.split(key, 6)

    drop_prob = 0.3
    keep_prob = 1.0 - drop_prob
    module = DropPath(drop_prob=drop_prob)
    module.training = True

    # --- Test 1: NCHW input, F a multiple of 128 (row-folding path) ---
    x = jax.random.normal(k_x, (2, 4, 16, 16), dtype=jnp.float32)
    out = jax.block_until_ready(module(x, key=k_mask))
    u = jax.random.uniform(k_mask, (x.shape[0], 1), dtype=jnp.float32)
    ref_scale = jnp.floor(keep_prob + u) / keep_prob
    ref = (x * ref_scale.reshape(x.shape[0], 1, 1, 1)).astype(x.dtype)
    assert jnp.allclose(out, ref, atol=1e-6, rtol=1e-6), "mismatch vs reference (test 1)"

    # --- Test 2: awkward feature size, no padding, masked edge block ---
    x2 = jax.random.normal(k_x2, (2, 3, 5, 7), dtype=jnp.float32)
    out2 = jax.block_until_ready(module(x2, key=k_mask2))
    u2 = jax.random.uniform(k_mask2, (x2.shape[0], 1), dtype=jnp.float32)
    ref_scale2 = jnp.floor(keep_prob + u2) / keep_prob
    ref2 = (x2 * ref_scale2.reshape(x2.shape[0], 1, 1, 1)).astype(x2.dtype)
    assert jnp.allclose(out2, ref2, atol=1e-6, rtol=1e-6), "mismatch vs reference (test 2)"

    # --- Test 3: bf16 input (dtype-aware sublane, mixed-precision multiply) ---
    x3 = jax.random.normal(k_x3, (4, 8, 32), dtype=jnp.float32).astype(jnp.bfloat16)
    out3 = jax.block_until_ready(module(x3, key=k_mask3))
    u3 = jax.random.uniform(k_mask3, (x3.shape[0], 1), dtype=jnp.float32)
    ref_scale3 = jnp.floor(keep_prob + u3) / keep_prob
    ref3 = (x3.astype(jnp.float32) * ref_scale3.reshape(x3.shape[0], 1, 1)).astype(jnp.bfloat16)
    assert jnp.allclose(out3.astype(jnp.float32), ref3.astype(jnp.float32),
                        atol=1e-6, rtol=1e-6), "mismatch vs reference (test 3, bf16)"

    # --- Eval path (identity) ---
    module.training = False
    out_eval = jax.block_until_ready(module(x))
    assert jnp.array_equal(out_eval, x), "eval path should be identity"

    print("KERNEL_OK")
</pallas_src>

<mosaic_0001>
module attributes {stable_mosaic.version = 11 : i64} {
  func.func @_drop_path_kernel(%arg0: i32, %arg1: i32, %arg2: memref<8x256xf32, #tpu.memory_space<vmem>>, %arg3: memref<8x1xf32, #tpu.memory_space<vmem>>, %arg4: memref<8x256xf32, #tpu.memory_space<vmem>>) attributes {dimension_semantics = [#tpu.dimension_semantics<parallel>, #tpu.dimension_semantics<parallel>], iteration_bounds = array<i64: 1, 1>, scalar_prefetch = 0 : i64, scratch_operands = 0 : i64, tpu.core_type = #tpu.core_type<tc>, window_params = [{transform_indices = @transform_0, window_bounds = array<i64: 8, 256>}, {transform_indices = @transform_1, window_bounds = array<i64: 8, 1>}, {transform_indices = @transform_2, window_bounds = array<i64: 8, 256>}]} {
    %c0 = arith.constant 0 : index
    %c0_0 = arith.constant 0 : index
    %0 = vector.load %arg2[%c0, %c0_0] : memref<8x256xf32, #tpu.memory_space<vmem>>, vector<8x256xf32>
    %c0_1 = arith.constant 0 : index
    %c0_2 = arith.constant 0 : index
    %1 = vector.load %arg3[%c0_1, %c0_2] : memref<8x1xf32, #tpu.memory_space<vmem>>, vector<8x1xf32>
    %2 = vector.broadcast %1 : vector<8x1xf32> to vector<8x256xf32>
    %3 = arith.mulf %0, %2 : vector<8x256xf32>
    %c0_3 = arith.constant 0 : index
    %c0_4 = arith.constant 0 : index
    %4 = vector.load %arg4[%c0_3, %c0_4] : memref<8x256xf32, #tpu.memory_space<vmem>>, vector<8x256xf32>
    tpu.vector_store %arg4[%c0_3, %c0_4], %3 {strides = array<i32>} : memref<8x256xf32, #tpu.memory_space<vmem>>, vector<8x256xf32>,
    return
  }
  func.func @transform_0(%arg0: i32, %arg1: i32) -> (i32, i32) {
    %c0_i32 = arith.constant 0 : i32
    return %arg0, %arg1 : i32, i32
  }
  func.func @transform_1(%arg0: i32, %arg1: i32) -> (i32, i32) {
    %c0_i32 = arith.constant 0 : i32
    %c0_i32_0 = arith.constant 0 : i32
    return %arg0, %c0_i32 : i32, i32
  }
  func.func @transform_2(%arg0: i32, %arg1: i32) -> (i32, i32) {
    %c0_i32 = arith.constant 0 : i32
    return %arg0, %arg1 : i32, i32
  }
}

</mosaic_0001>

<bundles_post_ra>
// kernel: tpu_custom_call.1
= control target key start
LH: loop header
LB: loop body
LE: loop exit
PB: predicated region body
PF: predicated region fallthrough
CT: control target
= control target key end

     0   :  { %7 = vsyncpa [#allocation3], 0  ;;  %s148_s0 = inlined_call_operand.hbm [shape: f32[8,256], index: 0, kind: input, shape index: {}]   ;;  %s149_s1 = inlined_call_operand.vmem [shape: f32[8,1], index: 1, kind: input, shape index: {}]   ;;  %s150_s2 = inlined_call_operand.hbm [shape: f32[8,256], index: 2, kind: output, shape index: {}]  }
   0x1   :  { %8 = vsyncpa [#allocation4], 0  ;;  %s103_s9 = smov [#allocation2]   ;;  %s55_s13 = scalar_lea.hbm %s148_s0, 256 }
   0x2   :  { %s15_s10 = sshll.u32 %s103_s9, 4  ;;  %p56_p0 = scmp.ne.s32.totalorder %s148_s0, %s55_s13  ;;  %s16_s10 = int_to_ptr.vmem [resolvable:$true] %s15_s10 }
   0x3   :  { %p59_p1 = scmp.lt.u32.totalorder %s55_s13, %s148_s0 }
   0x5   :  { %p61_p2 = pnand %p59_p1, %p56_p0 }
   0x7   :  { %64 = shalt.err (!%p61_p2)
}
   0x8   :  { %s65_s18 = scalar_lea.vmem %s16_s10, 256  ;;  %p70_p4 = scmp.lt.s32.totalorder %s16_s10, %s16_s10 }
   0x9   :  { %p66_p3 = scmp.ne.s32.totalorder %s16_s10, %s65_s18  ;;  %p71_p5 = scmp.lt.s32.totalorder %s65_s18, %s65_s18 }
   0xb   :  { %p72_p6 = por %p71_p5, %p70_p4 }
   0xd   :  { %p73_p7 = pnand %p72_p6, %p66_p3 }
   0xf   :  { %76 = shalt.err (!%p73_p7)
}
  0x10   :  { %18 = dma.hbm_to_vmem [thread:$0]  %s148_s0, 256, %s16_s10, [#allocation3]  }
  0x11   :  { %99 = dma.done.wait [#allocation3], 256  }
  0x12   :  { %100 = vsyncadd [#allocation3], 4294967040  ;;  %v104_v0 = vmov 0   ;;  %v26_v1 = vld [vmem:[%s149_s1] sm:$0xff]  ;;  %v25_v3 = vld [vmem:[#allocation2 + $0x8] sm:$0xff]  ;;  %s105_s23 = smov [#allocation5]  }
  0x13   :  { %54 = vset.pattern.permute.xlu0 %v104_v0  ;;  %v24_v2 = vld [vmem:[#allocation2] sm:$0xff]  ;;  %s42_s24 = sshll.u32 %s105_s23, 4  ;;  %s43_s24 = int_to_ptr.vmem [resolvable:$true] %s42_s24 }
  0x14   :  { %29 = vperm.xlu0 %54, %v26_v1   ;;  %s77_s0 = scalar_lea.vmem %s43_s24, 256  ;;  %p82_p9 = scmp.lt.s32.totalorder %s43_s24, %s43_s24 }
  0x15   :  { %p78_p8 = scmp.ne.s32.totalorder %s43_s24, %s77_s0  ;;  %p83_p10 = scmp.lt.s32.totalorder %s77_s0, %s77_s0 }
  0x17   :  { %p84_p11 = por %p83_p10, %p82_p9 }
  0x19   :  { %p85_p12 = pnand %p84_p11, %p78_p8 }
  0x93   :  { %v30_v4 = vpop.permute.xlu0 %29 }
  0x94   :  { %v32_v5 = vmul.f32 %v30_v4, %v24_v2  ;;  %v33_v6 = vmul.f32 %v30_v4, %v25_v3 }
  0x96   :  { %34 = vst [vmem:[#allocation5] sm:$0xff] %v32_v5  ;;  %35 = vst [vmem:[#allocation5 + $0x8] sm:$0xff] %v33_v6 }
  0x97   :  { %88 = shalt.err (!%p85_p12)
}
  0x98   :  { %s89_s26 = scalar_lea.hbm %s150_s2, 256 }
  0x99   :  { %p90_p13 = scmp.ne.s32.totalorder %s150_s2, %s89_s26  ;;  %p93_p0 = scmp.lt.u32.totalorder %s89_s26, %s150_s2 }
  0x9b   :  { %p95_p1 = pnand %p93_p0, %p90_p13 }
  0x9d   :  { %98 = shalt.err (!%p95_p1)
}
  0x9e   :  { %45 = dma.vmem_to_hbm [thread:$0]  %s43_s24, 256, %s150_s2, [#allocation4]  }
  0x9f   :  { %101 = dma.done.wait [#allocation4], 256  }
  0xa0   :  { %102 = vsyncadd [#allocation4], 4294967040 }
  0xa1   :  { %49 = vsyncpa [#allocation3], 1 }
  0xa2   :  { %50 = vsyncpa [#allocation4], 1 }

</bundles_post_ra>
